<compile_context>
chip_gen: v7x
topology: tpu7x:2x2x1
jax: 0.10.0
libtpu: 0.0.40
codegen_flags: <defaults>
</compile_context>

<pallas_src>
import math

import jax
import jax.numpy as jnp
from jax.experimental import pallas as pl
from jax.experimental.pallas import tpu as pltpu

_MAX_ROW_TILE = 2048    # rows per grid step at large n (mem-bound: big tiles amortize step cost)
_MIN_SPLIT_ROWS = 256   # above this, keep >= 2 grid steps (v7x megacore)
_PALLAS_MIN_ROWS = 256  # below this, a fused XLA dot is as fast (fixed kernel latency dominates)


def _fused_encoders_kernel(xa_ref, xb_ref, xc_ref,
                           wa_ref, wb_ref, wc_ref,
                           ba_ref, bb_ref, bc_ref,
                           oa_ref, ob_ref, oc_ref):
    # x*_ref: (tm, d_v)   w*_ref: (d_v, d_r)   b*_ref: (1, d_r)   o*_ref: (tm, d_r)
    oa_ref[...] = (jnp.dot(xa_ref[...], wa_ref[...],
                           preferred_element_type=jnp.float32)
                   + ba_ref[...]).astype(oa_ref.dtype)
    ob_ref[...] = (jnp.dot(xb_ref[...], wb_ref[...],
                           preferred_element_type=jnp.float32)
                   + bb_ref[...]).astype(ob_ref.dtype)
    oc_ref[...] = (jnp.dot(xc_ref[...], wc_ref[...],
                           preferred_element_type=jnp.float32)
                   + bc_ref[...]).astype(oc_ref.dtype)


def _row_tile(n):
    """Row-tile size: single step for tiny n, >= 2 steps otherwise, capped at _MAX_ROW_TILE."""
    if n <= _MIN_SPLIT_ROWS:
        return n
    half = -(-n // 2)            # cdiv(n, 2) -> at least 2 grid steps for megacore
    half = -(-half // 8) * 8     # round up to a multiple of 8 (sublane alignment)
    return min(half, _MAX_ROW_TILE)


def _xla_forward(v_a, v_b, v_c, params):
    r_a = v_a @ params["w_a"] + params["b_a"]
    r_b = v_b @ params["w_b"] + params["b_b"]
    r_c = v_c @ params["w_c"] + params["b_c"]
    return r_a, r_b, r_c


def _pallas_forward(v_a, v_b, v_c, params, compute_dtype):
    n, d_v = v_a.shape
    d_r = params["w_a"].shape[-1]
    out_dtype = v_a.dtype

    w_a, w_b, w_c = params["w_a"], params["w_b"], params["w_c"]
    if compute_dtype is not None:
        # bf16 operand path: halve input-side HBM bytes; MXU still accumulates in f32.
        v_a = v_a.astype(compute_dtype)
        v_b = v_b.astype(compute_dtype)
        v_c = v_c.astype(compute_dtype)
        w_a = w_a.astype(compute_dtype)
        w_b = w_b.astype(compute_dtype)
        w_c = w_c.astype(compute_dtype)
    b_a, b_b, b_c = params["b_a"], params["b_b"], params["b_c"]  # bias stays f32

    tm = _row_tile(n)
    grid = (pl.cdiv(n, tm),)

    x_spec = pl.BlockSpec((tm, d_v), lambda i: (i, 0))
    # Weights / biases: index map independent of the grid index -> resident
    # across row tiles, no per-step re-DMA.
    w_spec = pl.BlockSpec((d_v, d_r), lambda i: (0, 0))
    b_spec = pl.BlockSpec((1, d_r), lambda i: (0, 0))
    o_spec = pl.BlockSpec((tm, d_r), lambda i: (i, 0))

    out_shape = tuple(jax.ShapeDtypeStruct((n, d_r), out_dtype) for _ in range(3))

    return pl.pallas_call(
        _fused_encoders_kernel,
        out_shape=out_shape,
        grid_spec=pl.GridSpec(
            grid=grid,
            in_specs=[x_spec, x_spec, x_spec,
                      w_spec, w_spec, w_spec,
                      b_spec, b_spec, b_spec],
            out_specs=(o_spec, o_spec, o_spec),
        ),
        compiler_params=pltpu.CompilerParams(
            dimension_semantics=("parallel",),
        ),
    )(v_a, v_b, v_c, w_a, w_b, w_c, b_a, b_b, b_c)


def linear_encoders_forward(v_a, v_b, v_c, params, *,
                            compute_dtype=None, force_pallas=False):
    """Forward pass of LinearEncoders.

    Args:
      v_a, v_b, v_c: (n, d_v) float32 arrays.
      params: dict with 'w_a','w_b','w_c' -> (d_v, d_r), 'b_a','b_b','b_c' -> (1, d_r).
      compute_dtype: optional (e.g. jnp.bfloat16) operand dtype for the Pallas
        path; accumulation stays f32, bias stays f32, outputs keep input dtype.
      force_pallas: bypass the tiny-n XLA fallback.
    Returns:
      (r_a, r_b, r_c), each (n, d_r).
    """
    n = v_a.shape[0]
    if (not force_pallas) and n < _PALLAS_MIN_ROWS:
        # At this size the call is dominated by fixed pallas_call + DMA latency;
        # a fused XLA dot is as fast or faster.
        return _xla_forward(v_a, v_b, v_c, params)
    return _pallas_forward(v_a, v_b, v_c, params, compute_dtype)


def init_params(key, d_v, d_r, dtype=jnp.float32):
    """Deterministic init mirroring nn.Linear defaults: U(-1/sqrt(d_v), 1/sqrt(d_v)).

    PyTorch weight is (d_r, d_v); we store the transpose (d_v, d_r) per encoder.
    """
    bound = 1.0 / math.sqrt(d_v)
    keys = jax.random.split(key, 6)
    params = {}
    for name, kw, kb in (("a", keys[0], keys[1]),
                         ("b", keys[2], keys[3]),
                         ("c", keys[4], keys[5])):
        params[f"w_{name}"] = jax.random.uniform(
            kw, (d_v, d_r), dtype, minval=-bound, maxval=bound)
        params[f"b_{name}"] = jax.random.uniform(
            kb, (1, d_r), dtype, minval=-bound, maxval=bound)
    return params


def _reference(v_a, v_b, v_c, params):
    return _xla_forward(v_a, v_b, v_c, params)


if __name__ == "__main__":
    fwd = jax.jit(linear_encoders_forward,
                  static_argnames=("compute_dtype", "force_pallas"))

    d_v, d_r = 16, 32
    key = jax.random.PRNGKey(0)
    k_a, k_b, k_c, k_p = jax.random.split(key, 4)
    params = init_params(k_p, d_v, d_r)

    # --- small-shape case (module's intended usage): exercise the Pallas kernel
    n = 8
    v_a = jax.random.normal(k_a, (n, d_v), jnp.float32)
    v_b = jax.random.normal(k_b, (n, d_v), jnp.float32)
    v_c = jax.random.normal(k_c, (n, d_v), jnp.float32)

    r_a, r_b, r_c = fwd(v_a, v_b, v_c, params, force_pallas=True)
    jax.block_until_ready((r_a, r_b, r_c))

    ref_a, ref_b, ref_c = _reference(v_a, v_b, v_c, params)
    assert r_a.shape == r_b.shape == r_c.shape == (n, d_r)
    assert jnp.allclose(r_a, ref_a, atol=1e-5)
    assert jnp.allclose(r_b, ref_b, atol=1e-5)
    assert jnp.allclose(r_c, ref_c, atol=1e-5)

    # --- larger-n cases: multi-step row-tiled grid (>=2 steps), incl. ragged last tile
    for n2 in (1024, 1000):
        k2a, k2b, k2c = jax.random.split(jax.random.PRNGKey(n2), 3)
        u_a = jax.random.normal(k2a, (n2, d_v), jnp.float32)
        u_b = jax.random.normal(k2b, (n2, d_v), jnp.float32)
        u_c = jax.random.normal(k2c, (n2, d_v), jnp.float32)

        s_a, s_b, s_c = fwd(u_a, u_b, u_c, params)
        jax.block_until_ready((s_a, s_b, s_c))

        sref_a, sref_b, sref_c = _reference(u_a, u_b, u_c, params)
        assert s_a.shape == s_b.shape == s_c.shape == (n2, d_r)
        assert jnp.allclose(s_a, sref_a, atol=1e-5)
        assert jnp.allclose(s_b, sref_b, atol=1e-5)
        assert jnp.allclose(s_c, sref_c, atol=1e-5)

    # --- bf16 operand path (HBM-bound lever): f32 accumulation, f32 bias/output
    n3 = 1024
    k3a, k3b, k3c = jax.random.split(jax.random.PRNGKey(3), 3)
    t_a = jax.random.normal(k3a, (n3, d_v), jnp.float32)
    t_b = jax.random.normal(k3b, (n3, d_v), jnp.float32)
    t_c = jax.random.normal(k3c, (n3, d_v), jnp.float32)

    q_a, q_b, q_c = fwd(t_a, t_b, t_c, params, compute_dtype=jnp.bfloat16)
    jax.block_until_ready((q_a, q_b, q_c))

    qref_a, qref_b, qref_c = _reference(t_a, t_b, t_c, params)
    assert q_a.dtype == jnp.float32
    assert jnp.allclose(q_a, qref_a, atol=5e-2, rtol=5e-2)
    assert jnp.allclose(q_b, qref_b, atol=5e-2, rtol=5e-2)
    assert jnp.allclose(q_c, qref_c, atol=5e-2, rtol=5e-2)

    print("KERNEL_OK")
</pallas_src>

<mosaic_0001>
module attributes {stable_mosaic.version = 11 : i64} {
  func.func @_fused_encoders_kernel(%arg0: i32, %arg1: memref<8x16xf32, #tpu.memory_space<vmem>>, %arg2: memref<8x16xf32, #tpu.memory_space<vmem>>, %arg3: memref<8x16xf32, #tpu.memory_space<vmem>>, %arg4: memref<16x32xf32, #tpu.memory_space<vmem>>, %arg5: memref<16x32xf32, #tpu.memory_space<vmem>>, %arg6: memref<16x32xf32, #tpu.memory_space<vmem>>, %arg7: memref<1x32xf32, #tpu.memory_space<vmem>>, %arg8: memref<1x32xf32, #tpu.memory_space<vmem>>, %arg9: memref<1x32xf32, #tpu.memory_space<vmem>>, %arg10: memref<8x32xf32, #tpu.memory_space<vmem>>, %arg11: memref<8x32xf32, #tpu.memory_space<vmem>>, %arg12: memref<8x32xf32, #tpu.memory_space<vmem>>) attributes {dimension_semantics = [#tpu.dimension_semantics<parallel>], iteration_bounds = array<i64: 1>, scalar_prefetch = 0 : i64, scratch_operands = 0 : i64, tpu.core_type = #tpu.core_type<tc>, window_params = [{transform_indices = @transform_0, window_bounds = array<i64: 8, 16>}, {transform_indices = @transform_1, window_bounds = array<i64: 8, 16>}, {transform_indices = @transform_2, window_bounds = array<i64: 8, 16>}, {pipeline_mode = #tpu.pipeline_mode<synchronous>, transform_indices = @transform_3, window_bounds = array<i64: 16, 32>}, {pipeline_mode = #tpu.pipeline_mode<synchronous>, transform_indices = @transform_4, window_bounds = array<i64: 16, 32>}, {pipeline_mode = #tpu.pipeline_mode<synchronous>, transform_indices = @transform_5, window_bounds = array<i64: 16, 32>}, {pipeline_mode = #tpu.pipeline_mode<synchronous>, transform_indices = @transform_6, window_bounds = array<i64: 1, 32>}, {pipeline_mode = #tpu.pipeline_mode<synchronous>, transform_indices = @transform_7, window_bounds = array<i64: 1, 32>}, {pipeline_mode = #tpu.pipeline_mode<synchronous>, transform_indices = @transform_8, window_bounds = array<i64: 1, 32>}, {transform_indices = @transform_9, window_bounds = array<i64: 8, 32>}, {transform_indices = @transform_10, window_bounds = array<i64: 8, 32>}, {transform_indices = @transform_11, window_bounds = array<i64: 8, 32>}]} {
    %c0 = arith.constant 0 : index
    %c0_0 = arith.constant 0 : index
    %0 = vector.load %arg1[%c0, %c0_0] : memref<8x16xf32, #tpu.memory_space<vmem>>, vector<8x16xf32>
    %c0_1 = arith.constant 0 : index
    %c0_2 = arith.constant 0 : index
    %1 = vector.load %arg4[%c0_1, %c0_2] : memref<16x32xf32, #tpu.memory_space<vmem>>, vector<16x32xf32>
    %cst = arith.constant dense<0.000000e+00> : vector<8x32xf32>
    %2 = tpu.matmul %0, %1, %cst {dimension_numbers = #tpu.dot_dimension_numbers<[1], [0], [0], [1], [0, 0, 1, 1], [], []>} : vector<8x16xf32>, vector<16x32xf32>, vector<8x32xf32> -> vector<8x32xf32>
    %c0_3 = arith.constant 0 : index
    %c0_4 = arith.constant 0 : index
    %3 = vector.load %arg7[%c0_3, %c0_4] : memref<1x32xf32, #tpu.memory_space<vmem>>, vector<1x32xf32>
    %4 = vector.broadcast %3 : vector<1x32xf32> to vector<8x32xf32>
    %5 = arith.addf %2, %4 : vector<8x32xf32>
    %c0_5 = arith.constant 0 : index
    %c0_6 = arith.constant 0 : index
    %6 = vector.load %arg10[%c0_5, %c0_6] : memref<8x32xf32, #tpu.memory_space<vmem>>, vector<8x32xf32>
    tpu.vector_store %arg10[%c0_5, %c0_6], %5 {strides = array<i32>} : memref<8x32xf32, #tpu.memory_space<vmem>>, vector<8x32xf32>,
    %c0_7 = arith.constant 0 : index
    %c0_8 = arith.constant 0 : index
    %7 = vector.load %arg2[%c0_7, %c0_8] : memref<8x16xf32, #tpu.memory_space<vmem>>, vector<8x16xf32>
    %c0_9 = arith.constant 0 : index
    %c0_10 = arith.constant 0 : index
    %8 = vector.load %arg5[%c0_9, %c0_10] : memref<16x32xf32, #tpu.memory_space<vmem>>, vector<16x32xf32>
    %cst_11 = arith.constant dense<0.000000e+00> : vector<8x32xf32>
    %9 = tpu.matmul %7, %8, %cst_11 {dimension_numbers = #tpu.dot_dimension_numbers<[1], [0], [0], [1], [0, 0, 1, 1], [], []>} : vector<8x16xf32>, vector<16x32xf32>, vector<8x32xf32> -> vector<8x32xf32>
    %c0_12 = arith.constant 0 : index
    %c0_13 = arith.constant 0 : index
    %10 = vector.load %arg8[%c0_12, %c0_13] : memref<1x32xf32, #tpu.memory_space<vmem>>, vector<1x32xf32>
    %11 = vector.broadcast %10 : vector<1x32xf32> to vector<8x32xf32>
    %12 = arith.addf %9, %11 : vector<8x32xf32>
    %c0_14 = arith.constant 0 : index
    %c0_15 = arith.constant 0 : index
    %13 = vector.load %arg11[%c0_14, %c0_15] : memref<8x32xf32, #tpu.memory_space<vmem>>, vector<8x32xf32>
    tpu.vector_store %arg11[%c0_14, %c0_15], %12 {strides = array<i32>} : memref<8x32xf32, #tpu.memory_space<vmem>>, vector<8x32xf32>,
    %c0_16 = arith.constant 0 : index
    %c0_17 = arith.constant 0 : index
    %14 = vector.load %arg3[%c0_16, %c0_17] : memref<8x16xf32, #tpu.memory_space<vmem>>, vector<8x16xf32>
    %c0_18 = arith.constant 0 : index
    %c0_19 = arith.constant 0 : index
    %15 = vector.load %arg6[%c0_18, %c0_19] : memref<16x32xf32, #tpu.memory_space<vmem>>, vector<16x32xf32>
    %cst_20 = arith.constant dense<0.000000e+00> : vector<8x32xf32>
    %16 = tpu.matmul %14, %15, %cst_20 {dimension_numbers = #tpu.dot_dimension_numbers<[1], [0], [0], [1], [0, 0, 1, 1], [], []>} : vector<8x16xf32>, vector<16x32xf32>, vector<8x32xf32> -> vector<8x32xf32>
    %c0_21 = arith.constant 0 : index
    %c0_22 = arith.constant 0 : index
    %17 = vector.load %arg9[%c0_21, %c0_22] : memref<1x32xf32, #tpu.memory_space<vmem>>, vector<1x32xf32>
    %18 = vector.broadcast %17 : vector<1x32xf32> to vector<8x32xf32>
    %19 = arith.addf %16, %18 : vector<8x32xf32>
    %c0_23 = arith.constant 0 : index
    %c0_24 = arith.constant 0 : index
    %20 = vector.load %arg12[%c0_23, %c0_24] : memref<8x32xf32, #tpu.memory_space<vmem>>, vector<8x32xf32>
    tpu.vector_store %arg12[%c0_23, %c0_24], %19 {strides = array<i32>} : memref<8x32xf32, #tpu.memory_space<vmem>>, vector<8x32xf32>,
    return
  }
  func.func @transform_0(%arg0: i32) -> (i32, i32) {
    %c0_i32 = arith.constant 0 : i32
    %c0_i32_0 = arith.constant 0 : i32
    return %arg0, %c0_i32 : i32, i32
  }
  func.func @transform_1(%arg0: i32) -> (i32, i32) {
    %c0_i32 = arith.constant 0 : i32
    %c0_i32_0 = arith.constant 0 : i32
    return %arg0, %c0_i32 : i32, i32
  }
  func.func @transform_2(%arg0: i32) -> (i32, i32) {
    %c0_i32 = arith.constant 0 : i32
    %c0_i32_0 = arith.constant 0 : i32
    return %arg0, %c0_i32 : i32, i32
  }
  func.func @transform_3(%arg0: i32) -> (i32, i32) {
    %c0_i32 = arith.constant 0 : i32
    %c0_i32_0 = arith.constant 0 : i32
    %c0_i32_1 = arith.constant 0 : i32
    return %c0_i32, %c0_i32_0 : i32, i32
  }
  func.func @transform_4(%arg0: i32) -> (i32, i32) {
    %c0_i32 = arith.constant 0 : i32
    %c0_i32_0 = arith.constant 0 : i32
    %c0_i32_1 = arith.constant 0 : i32
    return %c0_i32, %c0_i32_0 : i32, i32
  }
  func.func @transform_5(%arg0: i32) -> (i32, i32) {
    %c0_i32 = arith.constant 0 : i32
    %c0_i32_0 = arith.constant 0 : i32
    %c0_i32_1 = arith.constant 0 : i32
    return %c0_i32, %c0_i32_0 : i32, i32
  }
  func.func @transform_6(%arg0: i32) -> (i32, i32) {
    %c0_i32 = arith.constant 0 : i32
    %c0_i32_0 = arith.constant 0 : i32
    %c0_i32_1 = arith.constant 0 : i32
    return %c0_i32, %c0_i32_0 : i32, i32
  }
  func.func @transform_7(%arg0: i32) -> (i32, i32) {
    %c0_i32 = arith.constant 0 : i32
    %c0_i32_0 = arith.constant 0 : i32
    %c0_i32_1 = arith.constant 0 : i32
    return %c0_i32, %c0_i32_0 : i32, i32
  }
  func.func @transform_8(%arg0: i32) -> (i32, i32) {
    %c0_i32 = arith.constant 0 : i32
    %c0_i32_0 = arith.constant 0 : i32
    %c0_i32_1 = arith.constant 0 : i32
    return %c0_i32, %c0_i32_0 : i32, i32
  }
  func.func @transform_9(%arg0: i32) -> (i32, i32) {
    %c0_i32 = arith.constant 0 : i32
    %c0_i32_0 = arith.constant 0 : i32
    return %arg0, %c0_i32 : i32, i32
  }
  func.func @transform_10(%arg0: i32) -> (i32, i32) {
    %c0_i32 = arith.constant 0 : i32
    %c0_i32_0 = arith.constant 0 : i32
    return %arg0, %c0_i32 : i32, i32
  }
  func.func @transform_11(%arg0: i32) -> (i32, i32) {
    %c0_i32 = arith.constant 0 : i32
    %c0_i32_0 = arith.constant 0 : i32
    return %arg0, %c0_i32 : i32, i32
  }
}

</mosaic_0001>

<bundles_post_ra>
// kernel: linear_encoders_forward.1
= control target key start
LH: loop header
LB: loop body
LE: loop exit
PB: predicated region body
PF: predicated region fallthrough
CT: control target
= control target key end

     0   :  { %17 = vsyncpa [#allocation3], 0  ;;  %s858_s0 = inlined_call_operand.hbm [shape: f32[8,16], index: 0, kind: input, shape index: {}]   ;;  %s859_s1 = inlined_call_operand.hbm [shape: f32[8,16], index: 1, kind: input, shape index: {}]   ;;  %s860_s2 = inlined_call_operand.hbm [shape: f32[8,16], index: 2, kind: input, shape index: {}]   ;;  %s861_s3 = inlined_call_operand.vmem [shape: f32[16,32], index: 3, kind: input, shape index: {}]   ;;  %s862_s4 = inlined_call_operand.hbm [shape: f32[16,32], index: 4, kind: input, shape index: {}]   ;;  %s863_s5 = inlined_call_operand.hbm [shape: f32[16,32], index: 5, kind: input, shape index: {}]   ;;  %s864_s6 = inlined_call_operand.vmem [shape: f32[1,32], index: 6, kind: input, shape index: {}]   ;;  %s865_s7 = inlined_call_operand.vmem [shape: f32[1,32], index: 7, kind: input, shape index: {}]   ;;  %s866_s8 = inlined_call_operand.vmem [shape: f32[1,32], index: 8, kind: input, shape index: {}]   ;;  %s867_s9 = inlined_call_operand.hbm [shape: f32[8,32], index: 9, kind: output, shape index: {0}]   ;;  %s868_s10 = inlined_call_operand.hbm [shape: f32[8,32], index: 10, kind: output, shape index: {1}]   ;;  %s869_s11 = inlined_call_operand.hbm [shape: f32[8,32], index: 11, kind: output, shape index: {2}]  }
   0x1   :  { %18 = vsyncpa [#allocation6], 0 }
   0x2   :  { %19 = vsyncpa [#allocation9], 0 }
   0x3   :  { %20 = vsyncpa [#allocation4], 0 }
   0x4   :  { %21 = vsyncpa [#allocation13], 0  ;;  %s641_s17 = smov [#allocation5]   ;;  %s642_s19 = smov [#allocation8]  }
   0x5   :  { %s38_s18 = sshll.u32 %s641_s17, 4  ;;  %s59_s20 = sshll.u32 %s642_s19, 4  ;;  %s39_s18 = int_to_ptr.vmem [resolvable:$true] %s38_s18  ;;  %s714_s20 = int_to_ptr.vmem [resolvable:$true] %s59_s20 }
   0x6   :  { %s455_s23 = scalar_lea.hbm %s859_s1, 128 }
   0x7   :  { %p456_p0 = scmp.ne.s32.totalorder %s859_s1, %s455_s23  ;;  %p459_p1 = scmp.lt.u32.totalorder %s455_s23, %s859_s1 }
   0x9   :  { %p461_p2 = pnand %p459_p1, %p456_p0 }
   0xb   :  { %464 = shalt.err (!%p461_p2)
}
   0xc   :  { %s465_s28 = scalar_lea.vmem %s39_s18, 128  ;;  %p470_p4 = scmp.lt.s32.totalorder %s39_s18, %s39_s18 }
   0xd   :  { %p466_p3 = scmp.ne.s32.totalorder %s39_s18, %s465_s28  ;;  %p471_p5 = scmp.lt.s32.totalorder %s465_s28, %s465_s28 }
   0xf   :  { %p472_p6 = por %p471_p5, %p470_p4 }
  0x11   :  { %p473_p7 = pnand %p472_p6, %p466_p3 }
  0x13   :  { %476 = shalt.err (!%p473_p7)
}
  0x14   :  { %41 = dma.hbm_to_vmem [thread:$0]  %s859_s1, 128, %s39_s18, [#allocation6]  }
  0x15   :  { %s477_s14 = scalar_lea.hbm %s862_s4, 256 }
  0x16   :  { %p478_p8 = scmp.ne.s32.totalorder %s862_s4, %s477_s14  ;;  %p481_p9 = scmp.lt.u32.totalorder %s477_s14, %s862_s4 }
  0x18   :  { %p483_p10 = pnand %p481_p9, %p478_p8 }
  0x1a   :  { %486 = shalt.err (!%p483_p10)
}
  0x1b   :  { %s487_s21 = scalar_lea.vmem %s714_s20, 256  ;;  %p492_p12 = scmp.lt.s32.totalorder %s714_s20, %s714_s20 }
  0x1c   :  { %p488_p11 = scmp.ne.s32.totalorder %s714_s20, %s487_s21  ;;  %p493_p13 = scmp.lt.s32.totalorder %s487_s21, %s487_s21 }
  0x1e   :  { %p494_p0 = por %p493_p13, %p492_p12 }
  0x20   :  { %p495_p1 = pnand %p494_p0, %p488_p11 }
  0x22   :  { %498 = shalt.err (!%p495_p1)
}
  0x23   :  { %s643_s1 = smov 128   ;;  %s644_s18 = smov 8  }
  0x24   :  { %65 = dma.hbm_to_vmem [thread:$0]  %s862_s4, 256, %s714_s20, [#allocation9], %s643_s1, %s643_s1, %s644_s18  }
  0x25   :  { %s645_s24 = smov [#allocation2]   ;;  %s646_s26 = smov [#allocation7]  }
  0x26   :  { %s28_s25 = sshll.u32 %s645_s24, 4  ;;  %s48_s27 = sshll.u32 %s646_s26, 4  ;;  %s29_s25 = int_to_ptr.vmem [resolvable:$true] %s28_s25  ;;  %s49_s27 = int_to_ptr.vmem [resolvable:$true] %s48_s27 }
  0x27   :  { %s499_s30 = scalar_lea.hbm %s858_s0, 128 }
  0x28   :  { %p500_p2 = scmp.ne.s32.totalorder %s858_s0, %s499_s30  ;;  %p503_p3 = scmp.lt.u32.totalorder %s499_s30, %s858_s0 }
  0x2a   :  { %p505_p4 = pnand %p503_p3, %p500_p2 }
  0x2c   :  { %508 = shalt.err (!%p505_p4)
}
  0x2d   :  { %s509_s4 = scalar_lea.vmem %s29_s25, 128  ;;  %p514_p6 = scmp.lt.s32.totalorder %s29_s25, %s29_s25 }
  0x2e   :  { %p510_p5 = scmp.ne.s32.totalorder %s29_s25, %s509_s4  ;;  %p515_p7 = scmp.lt.s32.totalorder %s509_s4, %s509_s4 }
  0x30   :  { %p516_p8 = por %p515_p7, %p514_p6 }
  0x32   :  { %p517_p9 = pnand %p516_p8, %p510_p5 }
  0x34   :  { %520 = shalt.err (!%p517_p9)
}
  0x35   :  { %31 = dma.hbm_to_vmem [thread:$0]  %s858_s0, 128, %s29_s25, [#allocation3]  }
  0x36   :  { %s521_s21 = scalar_lea.hbm %s860_s2, 128 }
  0x37   :  { %p522_p10 = scmp.ne.s32.totalorder %s860_s2, %s521_s21  ;;  %p525_p11 = scmp.lt.u32.totalorder %s521_s21, %s860_s2 }
  0x39   :  { %p527_p12 = pnand %p525_p11, %p522_p10 }
  0x3b   :  { %530 = shalt.err (!%p527_p12)
}
  0x3c   :  { %s531_s28 = scalar_lea.vmem %s49_s27, 128  ;;  %p536_p0 = scmp.lt.s32.totalorder %s49_s27, %s49_s27 }
  0x3d   :  { %p532_p13 = scmp.ne.s32.totalorder %s49_s27, %s531_s28  ;;  %p537_p1 = scmp.lt.s32.totalorder %s531_s28, %s531_s28 }
  0x3f   :  { %p538_p2 = por %p537_p1, %p536_p0 }
  0x41   :  { %p539_p3 = pnand %p538_p2, %p532_p13 }
  0x43   :  { %542 = shalt.err (!%p539_p3)
}
  0x44   :  { %51 = dma.hbm_to_vmem [thread:$0]  %s860_s2, 128, %s49_s27, [#allocation6]  }
  0x45   :  { %s647_s29 = smov [#allocation10]   ;;  %s543_s14 = scalar_lea.hbm %s863_s5, 256 }
  0x46   :  { %s71_s30 = sshll.u32 %s647_s29, 4  ;;  %p544_p4 = scmp.ne.s32.totalorder %s863_s5, %s543_s14  ;;  %s72_s30 = int_to_ptr.vmem [resolvable:$true] %s71_s30 }
  0x47   :  { %p547_p5 = scmp.lt.u32.totalorder %s543_s14, %s863_s5 }
  0x49   :  { %p549_p6 = pnand %p547_p5, %p544_p4 }
  0x4b   :  { %552 = shalt.err (!%p549_p6)
}
  0x4c   :  { %s553_s17 = scalar_lea.vmem %s72_s30, 256  ;;  %p558_p8 = scmp.lt.s32.totalorder %s72_s30, %s72_s30 }
  0x4d   :  { %p554_p7 = scmp.ne.s32.totalorder %s72_s30, %s553_s17  ;;  %p559_p9 = scmp.lt.s32.totalorder %s553_s17, %s553_s17 }
  0x4f   :  { %p560_p10 = por %p559_p9, %p558_p8 }
  0x51   :  { %p561_p11 = pnand %p560_p10, %p554_p7 }
  0x53   :  { %564 = shalt.err (!%p561_p11)
}
  0x54   :  { %77 = dma.hbm_to_vmem [thread:$0]  %s863_s5, 256, %s72_s30, [#allocation9], %s643_s1, %s643_s1, %s644_s18  }
  0x55   :  { %631 = dma.done.wait [#allocation3], 128  }
  0x56   :  { %632 = vsyncadd [#allocation3], 4294967168 }
  0x57   :  { %633 = dma.done.wait [#allocation6], 256  }
  0x58   :  { %634 = vsyncadd [#allocation6], 4294967040 }
  0x59   :  { %635 = dma.done.wait [#allocation9], 512  }
  0x5a   :  { %636 = vsyncadd [#allocation9], 4294966784  ;;  %v648_v0 = vmov 0.0|0.0   ;;  %vm649_vm0 = vmmov 0   ;;  %v650_v1 = vmov 0.0   ;;  %v100_v2 = vld [vmem:[%s861_s3] sm:$0xff] }
  0x5b   :  { %433 = vmatprep.subr.bf16.mxu0 %v648_v0  ;;  %416 = vmatprep.mubr.msk.f32.mxu0 %vm649_vm0, %v650_v1  ;;  %v101_v3 = vld [vmem:[%s861_s3 + $0x8] sm:$0xff]  ;;  %v187_v6 = vld [vmem:[#allocation8 + $0x8] sm:$0xff]  ;;  %v270_v7 = vld [vmem:[#allocation10] sm:$0xff]  ;;  %vm109_vm1 = vcmask 130048   ;;  %s651_s22 = smov [#allocation11]   ;;  %s652_s28 = smov [#allocation12]  }
  0x5c   :  { %436 = vmatprep.subr.bf16.mxu1 %v648_v0  ;;  %423 = vmatprep.mubr.msk.f32.mxu1 %vm649_vm0, %v650_v1  ;;  %v434_v4 = vpack.c.bf16 %v101_v3, %v100_v2  ;;  %v186_v5 = vld [vmem:[#allocation8] sm:$0xff]  ;;  %v271_v9 = vld [vmem:[#allocation10 + $0x8] sm:$0xff]  ;;  %v99_v10 = vld [vmem:[#allocation2] sm:$0xff]  ;;  %s359_s23 = sshll.u32 %s651_s22, 4  ;;  %s369_s0 = sshll.u32 %s652_s28, 4  ;;  %vm183_vm2 = vcmask 261120   ;;  %s360_s23 = int_to_ptr.vmem [resolvable:$true] %s359_s23  ;;  %s805_s0 = int_to_ptr.vmem [resolvable:$true] %s369_s0 }
  0x5d   :  { %v437_v8 = vpack.c.bf16 %v187_v6, %v186_v5  ;;  %v440_v11 = vpack.c.bf16 %v271_v9, %v270_v7  ;;  %v185_v12 = vld [vmem:[#allocation5] sm:$0xff]  ;;  %v269_v13 = vld [vmem:[#allocation7] sm:$0xff]  ;;  %s653_s25 = smov [#allocation14]   ;;  %p570_p13 = scmp.lt.s32.totalorder %s360_s23, %s360_s23 }
  0x5e   :  { %435 = vmatpush3.bf16.msra.mxu0 %v434_v4  ;;  %v397_v14 = vld [vmem:[%s864_s6] ss:$0 sm:$0xff]  ;;  %s379_s29 = sshll.u32 %s653_s25, 4  ;;  %s808_s29 = int_to_ptr.vmem [resolvable:$true] %s379_s29 }
  0x5f   :  { %438 = vmatpush3.bf16.msra.mxu1 %v437_v8  ;;  %439 = vmatprep.subr.bf16.mxu0 %v648_v0  ;;  %v399_v15 = vld [vmem:[%s865_s7] ss:$0 sm:$0xff]  ;;  %s565_s7 = scalar_lea.vmem %s360_s23, 128 }
  0x60   :  { %v401_v22 = vld [vmem:[%s866_s8] ss:$0 sm:$0xff]  ;;  %p566_p12 = scmp.ne.s32.totalorder %s360_s23, %s565_s7  ;;  %p571_p0 = scmp.lt.s32.totalorder %s565_s7, %s565_s7 }
  0x61   :  { %417 = vmatmul.mubr.msk.f32.vlgmr.msra.gmra.mrb[0].mxu0 %vm109_vm1, %v99_v10 }
  0x62   :  { %441 = vmatpush3.bf16.msra.mxu0 %v440_v11  ;;  %424 = vmatmul.mubr.msk.f32.vlgmr.msra.gmra.mrb[0].mxu1 %vm109_vm1, %v185_v12  ;;  %p572_p1 = por %p571_p0, %p570_p13 }
  0x63   :  { %430 = vmatprep.mubr.msk.f32.mxu0 %vm649_vm0, %v650_v1 }
  0x64   :  { %p573_p2 = pnand %p572_p1, %p566_p12 }
  0x65   :  { %431 = vmatmul.mubr.msk.f32.vlgmr.msra.gmra.mrb[2].mxu0 %vm109_vm1, %v269_v13 }
 0x134   :  { %v179_v16 = vpop.f32.mrb[0].mxu0 }
 0x135   :  { %v180_v17 = vadd.f32 %v397_v14, %v179_v16  ;;  %v418_v18 = vpop.f32.mrb[1].mxu0  ;;  %v264_v19 = vpop.f32.mrb[0].mxu1 }
 0x136   :  { %v265_v20 = vadd.f32 %v399_v15, %v264_v19  ;;  %v425_v21 = vpop.f32.mrb[1].mxu1 }
 0x137   :  { %184 = vst.msk [vmem:[#allocation11] sm:$0xff] %vm183_vm2, %v180_v17 }
 0x138   :  { %v348_v23 = vpop.f32.mrb[2].mxu0  ;;  %268 = vst.msk [vmem:[#allocation12] sm:$0xff] %vm183_vm2, %v265_v20 }
 0x139   :  { %576 = shalt.err (!%p573_p2)
}
 0x13a   :  { %s577_s8 = scalar_lea.hbm %s867_s9, 128 }
 0x13b   :  { %p578_p3 = scmp.ne.s32.totalorder %s867_s9, %s577_s8  ;;  %p581_p4 = scmp.lt.u32.totalorder %s577_s8, %s867_s9 }
 0x13d   :  { %p583_p5 = pnand %p581_p4, %p578_p3 }
 0x13f   :  { %586 = shalt.err (!%p583_p5)
}
 0x140   :  { %362 = dma.vmem_to_hbm [thread:$0]  %s360_s23, 128, %s867_s9, [#allocation4]   ;;  %v349_v24 = vadd.f32 %v401_v22, %v348_v23  ;;  %v432_v25 = vpop.f32.mrb[3].mxu0 }
 0x141   :  { %s587_s2 = scalar_lea.vmem %s805_s0, 128  ;;  %p592_p7 = scmp.lt.s32.totalorder %s805_s0, %s805_s0 }
 0x142   :  { %p588_p6 = scmp.ne.s32.totalorder %s805_s0, %s587_s2  ;;  %p593_p8 = scmp.lt.s32.totalorder %s587_s2, %s587_s2 }
 0x144   :  { %p594_p9 = por %p593_p8, %p592_p7 }
 0x146   :  { %p595_p10 = pnand %p594_p9, %p588_p6 }
 0x148   :  { %598 = shalt.err (!%p595_p10)
}
 0x149   :  { %s599_s21 = scalar_lea.hbm %s868_s10, 128 }
 0x14a   :  { %p600_p11 = scmp.ne.s32.totalorder %s868_s10, %s599_s21  ;;  %p603_p12 = scmp.lt.u32.totalorder %s599_s21, %s868_s10 }
 0x14c   :  { %p605_p13 = pnand %p603_p12, %p600_p11 }
 0x14e   :  { %608 = shalt.err (!%p605_p13)
}
 0x14f   :  { %372 = dma.vmem_to_hbm [thread:$0]  %s805_s0, 128, %s868_s10, [#allocation13]   ;;  %352 = vst.msk [vmem:[#allocation14] sm:$0xff] %vm183_vm2, %v349_v24 }
 0x150   :  { %s609_s23 = scalar_lea.vmem %s808_s29, 128  ;;  %p614_p1 = scmp.lt.s32.totalorder %s808_s29, %s808_s29 }
 0x151   :  { %p610_p0 = scmp.ne.s32.totalorder %s808_s29, %s609_s23  ;;  %p615_p2 = scmp.lt.s32.totalorder %s609_s23, %s609_s23 }
 0x153   :  { %p616_p3 = por %p615_p2, %p614_p1 }
 0x155   :  { %p617_p4 = pnand %p616_p3, %p610_p0 }
 0x157   :  { %620 = shalt.err (!%p617_p4)
}
 0x158   :  { %s621_s28 = scalar_lea.hbm %s869_s11, 128 }
 0x159   :  { %p622_p5 = scmp.ne.s32.totalorder %s869_s11, %s621_s28  ;;  %p625_p6 = scmp.lt.u32.totalorder %s621_s28, %s869_s11 }
 0x15b   :  { %p627_p7 = pnand %p625_p6, %p622_p5 }
 0x15d   :  { %630 = shalt.err (!%p627_p7)
}
 0x15e   :  { %382 = dma.vmem_to_hbm [thread:$0]  %s808_s29, 128, %s869_s11, [#allocation13]  }
 0x15f   :  { %637 = dma.done.wait [#allocation4], 128  }
 0x160   :  { %638 = vsyncadd [#allocation4], 4294967168 }
 0x161   :  { %639 = dma.done.wait [#allocation13], 256  }
 0x162   :  { %640 = vsyncadd [#allocation13], 4294967040 }
 0x163   :  { %392 = vsyncpa [#allocation3], 1 }
 0x164   :  { %393 = vsyncpa [#allocation6], 1 }
 0x165   :  { %394 = vsyncpa [#allocation9], 1 }
 0x166   :  { %395 = vsyncpa [#allocation4], 1 }
 0x167   :  { %396 = vsyncpa [#allocation13], 1 }

</bundles_post_ra>
